<compile_context>
chip_gen: v5e
topology: v5e:2x2
jax: 0.10.0
libtpu: 0.0.40
codegen_flags: <defaults>
</compile_context>

<pallas_src>
import functools

import jax
import jax.numpy as jnp
from jax.experimental import pallas as pl
from jax.experimental.pallas import tpu as pltpu


_LANE = 128        # TPU lane width: one feature tile
_MAX_TB = 4096     # batch rows per grid step (sweepable 2048-8192)
_SPLIT_MIN = 1024  # below this, a single grid step is cheapest everywhere


def _round_up(v: int, m: int) -> int:
    return ((v + m - 1) // m) * m


def _pick_batch_tile(batch: int) -> int:
    if batch <= _SPLIT_MIN:
        return batch                                    # 1 step; full-dim block
    if batch <= 2 * _MAX_TB:
        # >= 2 grid steps so v7x megacore keeps both TensorCores busy.
        return min(_MAX_TB, _round_up(pl.cdiv(batch, 2), 8))
    return _MAX_TB


def _identity_leaf_kernel(x_ref, o_ref, *, col: int, lane: int):
    # x_ref: (TB, lane) VMEM tile = the feature tile containing `scope`.
    # o_ref: (1, TB)    lane-dense output row for this batch tile.
    x = x_ref[...]                                               # (TB, lane)
    lane_ids = jax.lax.broadcasted_iota(jnp.int32, (1, lane), 1)  # (1, lane)
    is_col = lane_ids == col
    onehot = is_col.astype(x.dtype)                              # (1, lane)
    # Zero every non-scope column first so stray inf/NaN in co-resident
    # features can never poison the one-hot gather (0 * inf = NaN otherwise).
    xsel = jnp.where(is_col, x, 0.0)                             # (TB, lane)
    # One-hot MXU contraction over the lane axis -> lane-dense (1, TB).
    # HIGHEST precision keeps the f32 selection exact (log then matches torch).
    sel = jax.lax.dot_general(
        onehot, xsel,
        dimension_numbers=(((1,), (1,)), ((), ())),
        preferred_element_type=jnp.float32,
        precision=jax.lax.Precision.HIGHEST)                     # (1, TB)
    o_ref[...] = jnp.log(sel).astype(o_ref.dtype)


def identity_leaf(x: jax.Array, scope: int) -> jax.Array:
    """log(x[:, scope]) computed in a Pallas TPU kernel."""
    batch, feats = x.shape
    if not (0 <= scope < feats):
        raise ValueError(f"scope={scope} out of range for {feats} features")

    # Feature-axis tiling: DMA only the 128-lane tile that contains `scope`.
    if feats <= _LANE:
        lane, fblk, col = feats, 0, scope
    else:
        lane, fblk, col = _LANE, scope // _LANE, scope % _LANE

    tb = _pick_batch_tile(batch)
    num_tiles = pl.cdiv(batch, tb)
    grid = (num_tiles,)

    out = pl.pallas_call(
        functools.partial(_identity_leaf_kernel, col=col, lane=lane),
        # Lane-dense output slab; wrapper reshapes/slices to (batch,).
        out_shape=jax.ShapeDtypeStruct((num_tiles, tb), x.dtype),
        grid_spec=pltpu.PrefetchScalarGridSpec(
            num_scalar_prefetch=0,
            grid=grid,
            # Only the feature tile containing `scope` is ever fetched.
            in_specs=[pl.BlockSpec((tb, lane), lambda i: (i, fblk))],
            out_specs=pl.BlockSpec((1, tb), lambda i: (i, 0)),
        ),
        compiler_params=pltpu.CompilerParams(
            # Batch tiles are independent -> shard across TCs on v7x megacore.
            dimension_semantics=("parallel",),
        ),
        cost_estimate=pl.CostEstimate(
            flops=2 * batch * lane,            # one-hot gather on the MXU
            transcendentals=batch,             # one log per row
            bytes_accessed=batch * (lane * 4 + 4),
        ),
    )(x)
    # (num_tiles, tb) -> (num_tiles*tb,) -> drop padded tail rows.
    return out.reshape(-1)[:batch]


if __name__ == "__main__":
    key = jax.random.PRNGKey(0)

    # Small shape consistent with the module: (batch, num_features), scope=5.
    batch, feats, scope = 8, 32, 5
    x = jax.random.uniform(key, (batch, feats), dtype=jnp.float32,
                           minval=0.1, maxval=1.0)   # positive so log is finite
    y = identity_leaf(x, scope)
    jax.block_until_ready(y)
    assert y.shape == (batch,)
    assert jnp.allclose(y, jnp.log(x[:, scope]), rtol=1e-6, atol=1e-6)

    # Feature-tiled path (feats > 128 -> only one 128-lane tile is fetched).
    key2 = jax.random.fold_in(key, 1)
    batch2, feats2, scope2 = 16, 256, 200
    x2 = jax.random.uniform(key2, (batch2, feats2), dtype=jnp.float32,
                            minval=0.1, maxval=1.0)
    y2 = identity_leaf(x2, scope2)
    jax.block_until_ready(y2)
    assert y2.shape == (batch2,)
    assert jnp.allclose(y2, jnp.log(x2[:, scope2]), rtol=1e-6, atol=1e-6)

    # Multi-tile + ragged batch path (2 grid steps, last tile padded; the
    # lane-dense output slab is sliced back to exactly `batch` rows).
    key3 = jax.random.fold_in(key, 2)
    batch3, feats3, scope3 = 1100, 256, 131
    x3 = jax.random.uniform(key3, (batch3, feats3), dtype=jnp.float32,
                            minval=0.1, maxval=1.0)
    y3 = identity_leaf(x3, scope3)
    jax.block_until_ready(y3)
    assert y3.shape == (batch3,)
    assert jnp.allclose(y3, jnp.log(x3[:, scope3]), rtol=1e-6, atol=1e-6)

    print("KERNEL_OK")
</pallas_src>

<mosaic_0001>
module attributes {stable_mosaic.version = 11 : i64} {
  func.func @_identity_leaf_kernel(%arg0: i32, %arg1: memref<8x32xf32, #tpu.memory_space<vmem>>, %arg2: memref<1x8xf32, #tpu.memory_space<vmem>>) attributes {dimension_semantics = [#tpu.dimension_semantics<parallel>], iteration_bounds = array<i64: 1>, scalar_prefetch = 0 : i64, scratch_operands = 0 : i64, tpu.core_type = #tpu.core_type<tc>, window_params = [{transform_indices = @transform_0, window_bounds = array<i64: 8, 32>}, {transform_indices = @transform_1, window_bounds = array<i64: 1, 8>}]} {
    %c0 = arith.constant 0 : index
    %c0_0 = arith.constant 0 : index
    %0 = vector.load %arg1[%c0, %c0_0] : memref<8x32xf32, #tpu.memory_space<vmem>>, vector<8x32xf32>
    %1 = tpu.iota {dimensions = array<i32: 1>} : vector<1x32xi32>
    %c5_i32 = arith.constant 5 : i32
    %2 = vector.broadcast %c5_i32 : i32 to vector<1x32xi32>
    %3 = arith.cmpi eq, %1, %2 : vector<1x32xi32>
    %4 = arith.extui %3 : vector<1x32xi1> to vector<1x32xi32>
    %5 = arith.sitofp %4 : vector<1x32xi32> to vector<1x32xf32>
    %cst = arith.constant 0.000000e+00 : f32
    %6 = vector.shape_cast %3 : vector<1x32xi1> to vector<1x32xi1>
    %7 = vector.broadcast %6 : vector<1x32xi1> to vector<8x32xi1>
    %8 = vector.broadcast %cst : f32 to vector<8x32xf32>
    %9 = arith.select %7, %0, %8 : vector<8x32xi1>, vector<8x32xf32>
    %cst_1 = arith.constant dense<0.000000e+00> : vector<1x8xf32>
    %10 = tpu.matmul %5, %9, %cst_1 {dimension_numbers = #tpu.dot_dimension_numbers<[1], [1], [0], [0], [0, 0, 1, 0], [], []>, precision = #tpu.contract_precision<fp32>} : vector<1x32xf32>, vector<8x32xf32>, vector<1x8xf32> -> vector<1x8xf32>
    %11 = math.log %10 : vector<1x8xf32>
    %c0_2 = arith.constant 0 : index
    %c0_3 = arith.constant 0 : index
    %12 = vector.load %arg2[%c0_2, %c0_3] : memref<1x8xf32, #tpu.memory_space<vmem>>, vector<1x8xf32>
    tpu.vector_store %arg2[%c0_2, %c0_3], %11 {strides = array<i32>} : memref<1x8xf32, #tpu.memory_space<vmem>>, vector<1x8xf32>,
    return
  }
  func.func @transform_0(%arg0: i32) -> (i32, i32) {
    %c0_i32 = arith.constant 0 : i32
    %c0_i32_0 = arith.constant 0 : i32
    return %arg0, %c0_i32 : i32, i32
  }
  func.func @transform_1(%arg0: i32) -> (i32, i32) {
    %c0_i32 = arith.constant 0 : i32
    %c0_i32_0 = arith.constant 0 : i32
    return %arg0, %c0_i32 : i32, i32
  }
}

</mosaic_0001>

<bundles_post_ra>
// kernel: tpu_custom_call.1
= control target key start
LH: loop header
LB: loop body
LE: loop exit
PB: predicated region body
PF: predicated region fallthrough
CT: control target
= control target key end

     0   :  { %6 = vsyncpa [#allocation3], 0  ;;  %s290_s0 = inlined_call_operand.hbm [shape: f32[8,32], index: 0, kind: input, shape index: {}]   ;;  %s291_s1 = inlined_call_operand.hbm [shape: f32[1,8], index: 1, kind: output, shape index: {}]  }
   0x1   :  { %7 = vsyncpa [#allocation4], 0  ;;  %s13_s8 = sshll.u32 %s290_s0, 4  ;;  %s266_s9 = smov [#allocation2]   ;;  %s14_s8 = int_to_ptr.hbm [resolvable:$true] %s13_s8 }
   0x2   :  { %s15_s10 = sshll.u32 %s266_s9, 4  ;;  %s16_s10 = int_to_ptr.vmem [resolvable:$true] %s15_s10 }
   0x3   :  { %18 = dma.hbm_to_vmem [thread:$0]  %s14_s8, 128, %s16_s10, [#allocation3]  }
   0x4   :  { %262 = dma.done.wait [#allocation3], 128  }
   0x5   :  { %263 = vsyncadd [#allocation3], 4294967168  ;;  %v24_v0 = vlaneseq  ;;  %v267_v2 = vmov 0.0   ;;  %vm31_vm1 = vcmask 261120   ;;  %v23_v5 = vld [vmem:[#allocation2] sm:$0xff]  ;;  %s268_s0 = smov [#allocation5]  }
   0x6   :  { %s193_s11 = sshll.u32 %s268_s0, 4  ;;  %s195_s14 = sshll.u32 %s291_s1, 4  ;;  %vm186_vm2 = vcmask 57344   ;;  %s194_s11 = int_to_ptr.vmem [resolvable:$true] %s193_s11  ;;  %s196_s14 = int_to_ptr.hbm [resolvable:$true] %s195_s14 }
   0x7   :  { %v25_v1 = vand.u32 127, %v24_v0 }
   0x9   :  { %vm26_vm0 = vcmp.eq.s32.totalorder %v25_v1, 5 }
   0xa   :  { %v205_v3 = vsel %vm26_vm0, 1.0, %v267_v2  ;;  %v30_v7 = vsel %vm26_vm0, %v23_v5, 0.0 }
   0xb   :  { %v33_v4 = vsel %vm31_vm1, %v205_v3, 0  ;;  %v36_v8 = vsel %vm31_vm1, %v30_v7, 0 }
   0xc   :  { %v56_v6 = vsub.f32 %v33_v4, %v33_v4  ;;  %v53_v10 = vand.u32 4294901760, %v36_v8 }
   0xe   :  { %v57_v9 = vand.u32 4294901760, %v56_v6  ;;  %v80_v12 = vsub.f32 %v36_v8, %v53_v10  ;;  %54 = vmatpush.xpose.msra.mxu0 %v53_v10  ;;  %130 = vmatpush.xpose.msra.mxu3 %v53_v10 }
  0x10   :  { %v58_v11 = vsub.f32 %v56_v6, %v57_v9  ;;  %107 = vmatpush.xpose.msra.mxu2 %v80_v12  ;;  %v81_v14 = vand.u32 4294901760, %v80_v12 }
  0x11   :  { %134 = vmatmul.f32.vlgmr.msra.gmra.mxu3 %v57_v9 }
  0x12   :  { %v59_v13 = vand.u32 4294901760, %v58_v11  ;;  %v82_v15 = vsub.f32 %v80_v12, %v81_v14  ;;  %156 = vmatpush.xpose.msrb.mxu0 %v81_v14 }
  0x13   :  { %110 = vmatmul.f32.vlgmr.msra.gmra.mxu2 %v56_v6 }
  0x14   :  { %60 = vmatmul.f32.vlgmr.msra.gmra.mxu0 %v59_v13  ;;  %v83_v16 = vand.u32 4294901760, %v82_v15 }
  0x16   :  { %84 = vmatpush.xpose.msra.mxu1 %v83_v16 }
  0x19   :  { %206 = vmatmul.msk.f32.vlgmr.msra.gmra.mxu1 %vm31_vm1, %v205_v3 }
  0x1a   :  { %178 = vmatpush.xpose.msrb.mxu1 %v53_v10 }
  0x1c   :  { %207 = vmatmul.msk.f32.vlgmr.msrb.gmra.mxu0 %vm31_vm1, %v205_v3 }
  0x21   :  { %208 = vmatmul.msk.f32.vlgmr.msrb.gmra.mxu1 %vm31_vm1, %v205_v3 }
  0x91   :  { %v61_v17 = vpop.f32.mrf.mxu0 }
  0x94   :  { %v135_v21 = vpop.f32.mrf.mxu3 }
  0x96   :  { %v87_v18 = vpop.f32.mrf.mxu1  ;;  %v111_v19 = vpop.f32.mrf.mxu2 }
  0x97   :  { %v88_v20 = vadd.f32 %v87_v18, %v61_v17 }
  0x99   :  { %v112_v22 = vadd.f32 %v111_v19, %v88_v20  ;;  %v159_v23 = vpop.f32.mrf.mxu0 }
  0x9b   :  { %v136_v24 = vadd.f32 %v135_v21, %v112_v22 }
  0x9d   :  { %v160_v25 = vadd.f32 %v159_v23, %v136_v24 }
  0x9e   :  { %v181_v26 = vpop.f32.mrf.mxu1 }
  0x9f   :  { %v182_v27 = vadd.f32 %v181_v26, %v160_v25 }
  0xa1   :  { %212 = vlog2.f32 %v182_v27 }
  0xa7   :  { %v213_v28 = vpop.eup %212 }
  0xa8   :  { %v185_v29 = vmul.f32 0.6931472, %v213_v28 }
  0xaa   :  { %187 = vst.msk [vmem:[#allocation5] sm:$0x1] %vm186_vm2, %v185_v29 }
  0xab   :  { %198 = dma.vmem_to_hbm [thread:$0]  %s194_s11, 16, %s196_s14, [#allocation4]  }
  0xac   :  { %264 = dma.done.wait [#allocation4], 16  }
  0xad   :  { %265 = vsyncadd [#allocation4], 4294967280 }
  0xae   :  { %203 = vsyncpa [#allocation3], 1 }
  0xaf   :  { %204 = vsyncpa [#allocation4], 1 }

</bundles_post_ra>
